<compile_context>
chip_gen: v6e
topology: v6e:2x2x1
jax: 0.10.0
libtpu: 0.0.40
codegen_flags: <defaults>
</compile_context>

<pallas_src>
import jax
import jax.numpy as jnp
from jax.experimental import pallas as pl
from jax.experimental.pallas import tpu as pltpu

_LANE = 512            # lane-dense width (multiple of 128)
_MAX_TILE_ROWS = 1024  # 1024 x 512 f32 = 2 MiB per input per pipeline buffer


def _weight_l1_kernel(w_ref, x_ref, t_ref, part_ref):
    """One grid step: weighted |x - t| over a (tile_r, LANE) tile -> (8, LANE) partial."""
    x = x_ref[...].astype(jnp.float32)
    t = t_ref[...].astype(jnp.float32)

    diff = jnp.abs(x - t)
    # Fused weight select: one vselect + one vmul per vreg.
    w = jnp.where(t < jnp.float32(1.0), w_ref[0], w_ref[1])
    weighted = diff * w

    tile_r, lane = weighted.shape
    # Partial reduce over the leading (non-tiled) axis only: pure VPU adds,
    # no cross-lane (XLU) work inside the streaming loop.
    partial = jnp.sum(weighted.reshape(tile_r // 8, 8, lane), axis=0)
    part_ref[0] = partial


def weight_l1_loss(inp, tgt, weight=None, reduction='mean'):
    """Weighted L1 loss computed with a Pallas TPU kernel. Returns scalar f32."""
    if weight is None:
        weight = (1.0, 1.0)
    assert inp.shape == tgt.shape, "input/target shape mismatch"

    n = 1
    for d in inp.shape:
        n *= int(d)

    lane = _LANE
    rows = -(-n // lane)               # ceil(n / lane)
    rows = ((rows + 7) // 8) * 8       # multiple of 8 sublanes
    tile_r = min(_MAX_TILE_ROWS, rows)
    num_blocks = -(-rows // tile_r)
    rows_pad = num_blocks * tile_r
    n_pad = rows_pad * lane

    x = inp.reshape(-1)
    t = tgt.reshape(-1)
    if n_pad != n:
        # Zero padding contributes |0 - 0| * w0 = 0 to the sum, so it is exact.
        x = jnp.pad(x, (0, n_pad - n))
        t = jnp.pad(t, (0, n_pad - n))
    x2 = x.reshape(rows_pad, lane)
    t2 = t.reshape(rows_pad, lane)

    w = jnp.asarray(weight, dtype=jnp.float32).reshape(2)

    partials = pl.pallas_call(
        _weight_l1_kernel,
        out_shape=jax.ShapeDtypeStruct((num_blocks, 8, lane), jnp.float32),
        grid_spec=pltpu.PrefetchScalarGridSpec(
            num_scalar_prefetch=0,
            grid=(num_blocks,),
            in_specs=[
                pl.BlockSpec(memory_space=pltpu.MemorySpace.SMEM),   # (2,) weights
                pl.BlockSpec((tile_r, lane), lambda i: (i, 0)),
                pl.BlockSpec((tile_r, lane), lambda i: (i, 0)),
            ],
            out_specs=pl.BlockSpec((1, 8, lane), lambda i: (i, 0, 0)),
        ),
        compiler_params=pltpu.CompilerParams(
            dimension_semantics=("parallel",),   # shards blocks across TCs on v7x
        ),
    )(w, x2, t2)

    total = jnp.sum(partials, dtype=jnp.float32)
    if reduction == 'mean':
        return total / jnp.float32(n)
    return total


def _reference(inp, tgt, weight=(1.0, 1.0), reduction='mean'):
    t = jnp.abs(inp - tgt)
    ret = jnp.where(tgt < 1, t * weight[0], t * weight[1])
    return jnp.mean(ret) if reduction == 'mean' else jnp.sum(ret)


if __name__ == "__main__":
    key = jax.random.PRNGKey(0)
    k1, k2 = jax.random.split(key)

    # NCHW, small shapes: batch=2, channels=4, spatial=16
    B, C, H, W = 2, 4, 16, 16
    x = jax.random.normal(k1, (B, C, H, W), dtype=jnp.float32)
    # target straddles the `< 1` threshold so both branches of the where()
    # are exercised.
    y = jax.random.uniform(k2, (B, C, H, W), dtype=jnp.float32) * 2.0

    # Default weights (weight=None in __init__) + mean reduction.
    loss = jax.block_until_ready(
        weight_l1_loss(x, y, weight=(1.0, 1.0), reduction='mean'))
    ref = _reference(x, y, weight=(1.0, 1.0), reduction='mean')
    assert jnp.allclose(loss, ref, rtol=1e-5, atol=1e-6), (loss, ref)

    # Non-default weights + sum reduction (same compiled kernel, weights via SMEM).
    loss2 = jax.block_until_ready(
        weight_l1_loss(x, y, weight=(0.5, 2.0), reduction='sum'))
    ref2 = _reference(x, y, weight=(0.5, 2.0), reduction='sum')
    assert jnp.allclose(loss2, ref2, rtol=1e-5, atol=1e-5), (loss2, ref2)

    print("KERNEL_OK")
</pallas_src>

<mosaic_0001>
module attributes {stable_mosaic.version = 11 : i64} {
  func.func @_weight_l1_kernel(%arg0: i32, %arg1: memref<2xf32, #tpu.memory_space<smem>>, %arg2: memref<8x512xf32, #tpu.memory_space<vmem>>, %arg3: memref<8x512xf32, #tpu.memory_space<vmem>>, %arg4: memref<1x8x512xf32, #tpu.memory_space<vmem>>) attributes {dimension_semantics = [#tpu.dimension_semantics<parallel>], iteration_bounds = array<i64: 1>, scalar_prefetch = 0 : i64, scratch_operands = 0 : i64, tpu.core_type = #tpu.core_type<tc>, window_params = [{transform_indices = @transform_0, window_bounds = array<i64: 2>}, {transform_indices = @transform_1, window_bounds = array<i64: 8, 512>}, {transform_indices = @transform_2, window_bounds = array<i64: 8, 512>}, {transform_indices = @transform_3, window_bounds = array<i64: 1, 8, 512>}]} {
    %c0 = arith.constant 0 : index
    %c0_0 = arith.constant 0 : index
    %0 = vector.load %arg2[%c0, %c0_0] : memref<8x512xf32, #tpu.memory_space<vmem>>, vector<8x512xf32>
    %c0_1 = arith.constant 0 : index
    %c0_2 = arith.constant 0 : index
    %1 = vector.load %arg3[%c0_1, %c0_2] : memref<8x512xf32, #tpu.memory_space<vmem>>, vector<8x512xf32>
    %2 = arith.subf %0, %1 : vector<8x512xf32>
    %3 = math.absf %2 : vector<8x512xf32>
    %cst = arith.constant 1.000000e+00 : f32
    %4 = vector.broadcast %cst : f32 to vector<8x512xf32>
    %5 = arith.cmpf olt, %1, %4 : vector<8x512xf32>
    %c0_3 = arith.constant 0 : index
    %6 = memref.load %arg1[%c0_3] : memref<2xf32, #tpu.memory_space<smem>>
    %c1 = arith.constant 1 : index
    %7 = memref.load %arg1[%c1] : memref<2xf32, #tpu.memory_space<smem>>
    %8 = vector.broadcast %6 : f32 to vector<8x512xf32>
    %9 = vector.broadcast %7 : f32 to vector<8x512xf32>
    %10 = arith.select %5, %8, %9 : vector<8x512xi1>, vector<8x512xf32>
    %11 = arith.mulf %3, %10 : vector<8x512xf32>
    %12 = vector.shape_cast %11 : vector<8x512xf32> to vector<1x8x512xf32>
    %cst_4 = arith.constant dense<0.000000e+00> : vector<8x512xf32>
    %13 = vector.multi_reduction <add>, %12, %cst_4 [0] : vector<1x8x512xf32> to vector<8x512xf32>
    %c0_5 = arith.constant 0 : index
    %c0_6 = arith.constant 0 : index
    %c0_7 = arith.constant 0 : index
    %14 = vector.load %arg4[%c0_5, %c0_6, %c0_7] : memref<1x8x512xf32, #tpu.memory_space<vmem>>, vector<1x8x512xf32>
    %15 = vector.shape_cast %14 : vector<1x8x512xf32> to vector<8x512xf32>
    %16 = vector.shape_cast %13 : vector<8x512xf32> to vector<1x8x512xf32>
    tpu.vector_store %arg4[%c0_5, %c0_6, %c0_7], %16 {strides = array<i32>} : memref<1x8x512xf32, #tpu.memory_space<vmem>>, vector<1x8x512xf32>,
    return
  }
  func.func @transform_0(%arg0: i32) -> i32 {
    %c0_i32 = arith.constant 0 : i32
    %c0_i32_0 = arith.constant 0 : i32
    return %c0_i32 : i32
  }
  func.func @transform_1(%arg0: i32) -> (i32, i32) {
    %c0_i32 = arith.constant 0 : i32
    %c0_i32_0 = arith.constant 0 : i32
    return %arg0, %c0_i32 : i32, i32
  }
  func.func @transform_2(%arg0: i32) -> (i32, i32) {
    %c0_i32 = arith.constant 0 : i32
    %c0_i32_0 = arith.constant 0 : i32
    return %arg0, %c0_i32 : i32, i32
  }
  func.func @transform_3(%arg0: i32) -> (i32, i32, i32) {
    %c0_i32 = arith.constant 0 : i32
    %c0_i32_0 = arith.constant 0 : i32
    %c0_i32_1 = arith.constant 0 : i32
    return %arg0, %c0_i32, %c0_i32_0 : i32, i32, i32
  }
}

</mosaic_0001>

<bundles_post_ra>
// kernel: tpu_custom_call.1
= control target key start
LH: loop header
LB: loop body
LE: loop exit
PB: predicated region body
PF: predicated region fallthrough
CT: control target
= control target key end

     0   :  { %8 = vsyncpa [#allocation5], 0  ;;  %s224_s0 = inlined_call_operand.hbm [shape: f32[2], index: 0, kind: input, shape index: {}]   ;;  %s225_s1 = inlined_call_operand.hbm [shape: f32[8,512], index: 1, kind: input, shape index: {}]   ;;  %s226_s2 = inlined_call_operand.hbm [shape: f32[8,512], index: 2, kind: input, shape index: {}]   ;;  %s227_s3 = inlined_call_operand.hbm [shape: f32[1,8,512], index: 3, kind: output, shape index: {}]  }
   0x1   :  { %9 = vsyncpa [#allocation3], 0 }
   0x2   :  { %10 = vsyncpa [#allocation8], 0 }
   0x3   :  { %11 = vsyncpa [#allocation4], 0  ;;  %s188_s12 = smov [#allocation2]   ;;  %s189_s15 = smov [#allocation6]  }
   0x4   :  { %19 = dma.hbm_to_smem %s224_s0, 16, %s188_s12, [#allocation5]  }
   0x5   :  { %s26_s16 = sshll.u32 %s189_s15, 4  ;;  %s190_s17 = smov [#allocation7]   ;;  %s27_s16 = int_to_ptr.vmem [resolvable:$true] %s26_s16 }
   0x6   :  { %s36_s18 = sshll.u32 %s190_s17, 4  ;;  %s128_s19 = scalar_lea.vmem %s27_s16, 512  ;;  %s37_s18 = int_to_ptr.vmem [resolvable:$true] %s36_s18 }
   0x7   :  { %p129_p0 = scmp.ne.s32.totalorder %s27_s16, %s128_s19  ;;  %p133_p1 = scmp.lt.s32.totalorder %s27_s16, %s27_s16 }
   0x8   :  { %p134_p2 = scmp.lt.s32.totalorder %s128_s19, %s128_s19 }
   0xa   :  { %p135_p3 = por %p134_p2, %p133_p1 }
   0xc   :  { %p136_p4 = pnand %p135_p3, %p129_p0 }
   0xe   :  { %139 = shalt.err (!%p136_p4)
}
   0xf   :  { %29 = dma.hbm_to_vmem [thread:$0]  %s225_s1, 512, %s27_s16, [#allocation3]  }
  0x10   :  { %s148_s22 = scalar_lea.vmem %s37_s18, 512  ;;  %p153_p6 = scmp.lt.s32.totalorder %s37_s18, %s37_s18 }
  0x11   :  { %p149_p5 = scmp.ne.s32.totalorder %s37_s18, %s148_s22  ;;  %p154_p7 = scmp.lt.s32.totalorder %s148_s22, %s148_s22 }
  0x13   :  { %p155_p8 = por %p154_p7, %p153_p6 }
  0x15   :  { %p156_p9 = pnand %p155_p8, %p149_p5 }
  0x17   :  { %159 = shalt.err (!%p156_p9)
}
  0x18   :  { %39 = dma.hbm_to_vmem [thread:$0]  %s226_s2, 512, %s37_s18, [#allocation8]  }
  0x19   :  { %180 = dma.done.wait [#allocation5], 16  }
  0x1a   :  { %181 = vsyncadd [#allocation5], 4294967280 }
  0x1b   :  { %182 = dma.done.wait [#allocation3], 512  }
  0x1c   :  { %183 = vsyncadd [#allocation3], 4294966784 }
  0x1d   :  { %184 = dma.done.wait [#allocation8], 512  }
  0x1e   :  { %185 = vsyncadd [#allocation8], 4294966784 }
  0x1f   :  { %49 = sfence }
  0x20   :  { %v50_v0 = vld [vmem:[#allocation6] sm:$0xff]  ;;  %s70_s1 = sld [smem:[#allocation2]]  ;;  %v51_v2 = vld [vmem:[#allocation6 + $0x8] sm:$0xff]  ;;  %v52_v5 = vld [vmem:[#allocation6 + $0x10] sm:$0xff]  ;;  %s191_s2 = smov [#allocation9]  }
  0x21   :  { %v54_v1 = vld [vmem:[#allocation7] sm:$0xff]  ;;  %s107_s24 = sld [smem:[#allocation2 + $0x1]]  ;;  %v55_v4 = vld [vmem:[#allocation7 + $0x8] sm:$0xff]  ;;  %v56_v6 = vld [vmem:[#allocation7 + $0x10] sm:$0xff]  ;;  %s96_s25 = sshll.u32 %s191_s2, 4  ;;  %s97_s25 = int_to_ptr.vmem [resolvable:$true] %s96_s25 }
  0x22   :  { %v58_v3 = vsub.f32 %v50_v0, %v54_v1  ;;  %v59_v7 = vsub.f32 %v51_v2, %v55_v4  ;;  %v60_v8 = vsub.f32 %v52_v5, %v56_v6  ;;  %v53_v9 = vld [vmem:[#allocation6 + $0x18] sm:$0xff]  ;;  %vm66_vm0 = vcmp.lt.f32.partialorder %v54_v1, 1.0  ;;  %s160_s26 = scalar_lea.vmem %s97_s25, 512  ;;  %p165_p11 = scmp.lt.s32.totalorder %s97_s25, %s97_s25 }
  0x23   :  { %v57_v10 = vld [vmem:[#allocation7 + $0x18] sm:$0xff]  ;;  %vm67_vm1 = vcmp.lt.f32.partialorder %v55_v4, 1.0  ;;  %vm68_vm2 = vcmp.lt.f32.partialorder %v56_v6, 1.0  ;;  %p161_p10 = scmp.ne.s32.totalorder %s97_s25, %s160_s26  ;;  %p166_p12 = scmp.lt.s32.totalorder %s160_s26, %s160_s26 }
  0x24   :  { %v61_v11 = vsub.f32 %v53_v9, %v57_v10  ;;  %v62_v12 = vand.u32 2147483647, %v58_v3  ;;  %vm69_vm3 = vcmp.lt.f32.partialorder %v57_v10, 1.0  ;;  %v63_v13 = vand.u32 2147483647, %v59_v7 }
  0x25   :  { %v64_v14 = vand.u32 2147483647, %v60_v8  ;;  %p167_p13 = por %p166_p12, %p165_p11 }
  0x26   :  { %v65_v15 = vand.u32 2147483647, %v61_v11  ;;  %v72_v16 = vstv %s70_s1 }
  0x27   :  { %v73_v17 = vstv %s107_s24  ;;  %p168_p0 = pnand %p167_p13, %p161_p10 }
  0x28   :  { %v74_v18 = vsel %vm66_vm0, %v72_v16, %v73_v17  ;;  %v75_v19 = vsel %vm67_vm1, %v72_v16, %v73_v17  ;;  %v76_v20 = vsel %vm68_vm2, %v72_v16, %v73_v17  ;;  %v77_v21 = vsel %vm69_vm3, %v72_v16, %v73_v17 }
  0x29   :  { %v78_v22 = vmul.f32 %v74_v18, %v62_v12  ;;  %v79_v23 = vmul.f32 %v75_v19, %v63_v13  ;;  %v80_v24 = vmul.f32 %v76_v20, %v64_v14  ;;  %v81_v25 = vmul.f32 %v77_v21, %v65_v15 }
  0x2b   :  { %86 = vst [vmem:[#allocation9] sm:$0xff] %v78_v22  ;;  %87 = vst [vmem:[#allocation9 + $0x8] sm:$0xff] %v79_v23 }
  0x2c   :  { %88 = vst [vmem:[#allocation9 + $0x10] sm:$0xff] %v80_v24  ;;  %89 = vst [vmem:[#allocation9 + $0x18] sm:$0xff] %v81_v25 }
  0x2d   :  { %171 = shalt.err (!%p168_p0)
}
  0x2e   :  { %99 = dma.vmem_to_hbm [thread:$0]  %s97_s25, 512, %s227_s3, [#allocation4]  }
  0x2f   :  { %186 = dma.done.wait [#allocation4], 512  }
  0x30   :  { %187 = vsyncadd [#allocation4], 4294966784 }
  0x31   :  { %103 = vsyncpa [#allocation3], 1 }
  0x32   :  { %104 = vsyncpa [#allocation8], 1 }
  0x33   :  { %105 = vsyncpa [#allocation4], 1 }
  0x34   :  { %106 = vsyncpa [#allocation5], 1 }

</bundles_post_ra>
